<compile_context>
chip_gen: v5e
topology: v5e:2x2
jax: 0.10.0
libtpu: 0.0.40
codegen_flags: <defaults>
</compile_context>

<pallas_src>
import jax
import jax.numpy as jnp
from jax.experimental import pallas as pl
from jax.experimental.pallas import tpu as pltpu


def _fusion_cat_kernel(ir_ref, vi_ref, wir_ref, wvi_ref, b_ref, o_ref):
    # ir_ref, vi_ref : (bn, C, TL)    wir_ref, wvi_ref : (C, C)
    # b_ref          : (C, 1)         o_ref            : (bn, C, TL)
    w_ir = wir_ref[...]
    w_vi = wvi_ref[...]
    bias = b_ref[...]
    bn = o_ref.shape[0]
    # bn is small (<= 8) and static: a fully unrolled loop of 2-D MXU dots
    # avoids any batched-dot / transpose lowering inside the kernel.
    for i in range(bn):
        acc = jnp.dot(w_ir, ir_ref[i], preferred_element_type=jnp.float32)
        acc = acc + jnp.dot(w_vi, vi_ref[i], preferred_element_type=jnp.float32)
        o_ref[i] = (acc + bias).astype(o_ref.dtype)


def _vmem_budget():
    """(physical VMEM bytes, budget for pipelined tile buffers)."""
    cap = 64 * 1024 * 1024                       # conservative fallback (v7x)
    try:
        info = pltpu.get_tpu_info()
        cap = int(getattr(info, "vmem_capacity_bytes", cap)) or cap
    except Exception:
        pass
    budget = min(int(cap * 0.6), 96 * 1024 * 1024)
    return cap, budget


def _choose_tiling(n, c, hw, itemsize, vmem_budget):
    """Pick (bn, tl): batch sub-tile (divisor of n) and lane tile.

    Pipelined VMEM footprint ~= (2 inputs + 1 output) * 2 buffers
                                * bn * c * tl * itemsize.
    `hw` is already padded to a multiple of 128 (or equals the tiny raw extent).
    """
    bytes_per_lane = 6 * c * itemsize
    max_lanes = max(128, vmem_budget // bytes_per_lane)

    if hw <= max_lanes:
        # Whole (C, HW) image fits -> one fully contiguous DMA per image.
        tl = hw
        bn_cap = max(1, min(int(max_lanes // hw), n, 8))
        bn = 1
        for d in range(bn_cap, 0, -1):           # largest divisor of n <= cap
            if n % d == 0:
                bn = d
                break
    else:
        bn = 1
        tl = max(128, min((max_lanes // 128) * 128, 16384))

    # Megacore (v7x): avoid a single-program grid when there is enough work.
    def n_programs(bn_, tl_):
        return (n // bn_) * pl.cdiv(hw, tl_)

    if n_programs(bn, tl) < 2:
        if n >= 2:
            for d in range(n // 2, 0, -1):       # split along batch instead
                if n % d == 0:
                    bn = d
                    break
        elif hw >= 256:
            tl = ((hw // 2 + 127) // 128) * 128  # split the lane axis in two
    return bn, tl


def fusion_cat_forward(en_ir, en_vi, weight, bias):
    """Forward pass of Fusion_CAT.

    en_ir, en_vi : (N, C, H, W)   (NCHW, matching the PyTorch module)
    weight       : (C, 2C, 1, 1)  (PyTorch Conv2d weight layout)
    bias         : (C,)
    returns      : (N, C, H, W)
    """
    N, C, H, W = en_ir.shape
    assert en_vi.shape == (N, C, H, W)
    assert weight.shape == (C, 2 * C, 1, 1)
    assert bias.shape == (C,)

    HW = H * W
    # NCHW -> (N, C, HW): pure reshape (merge of last two dims).
    ir = en_ir.reshape(N, C, HW)
    vi = en_vi.reshape(N, C, HW)

    # Lane-dense output width: pad HW up to a multiple of 128 if needed.
    # Correct because every output lane depends only on the same input lane.
    # NOTE: if a spatial (lane-axis) reduction is ever added, mask these lanes.
    hw_pad = HW if HW % 128 == 0 else ((HW + 127) // 128) * 128
    if hw_pad != HW:
        pad = ((0, 0), (0, 0), (0, hw_pad - HW))
        ir = jnp.pad(ir, pad)
        vi = jnp.pad(vi, pad)

    # Split the 1x1-conv weight into ir/vi halves; keep (C_out, C_in) so the
    # kernel does W @ x directly (concat order is (ir, vi)).
    w2d = weight[:, :, 0, 0]                     # (C, 2C)
    w_ir = w2d[:, :C]                            # (C, C)
    w_vi = w2d[:, C:]                            # (C, C)
    b = bias.reshape(C, 1)                       # broadcasts along lanes

    itemsize = jnp.dtype(en_ir.dtype).itemsize
    vmem_cap, vmem_budget = _vmem_budget()
    bn, tl = _choose_tiling(N, C, hw_pad, itemsize, vmem_budget)
    grid = (N // bn, pl.cdiv(hw_pad, tl))

    footprint = 6 * bn * C * tl * itemsize + (2 * C * C + C) * 4
    vmem_limit = int(min(vmem_cap,
                         max(32 * 1024 * 1024, footprint + (16 << 20))))

    flops = 2 * N * hw_pad * (2 * C) * C
    bytes_accessed = 3 * N * C * hw_pad * itemsize + (w2d.size + C) * 4

    out = pl.pallas_call(
        _fusion_cat_kernel,
        out_shape=jax.ShapeDtypeStruct((N, C, hw_pad), en_ir.dtype),
        grid_spec=pltpu.PrefetchScalarGridSpec(
            num_scalar_prefetch=0,
            grid=grid,
            in_specs=[
                pl.BlockSpec((bn, C, tl), lambda n, j: (n, 0, j)),  # ir slab
                pl.BlockSpec((bn, C, tl), lambda n, j: (n, 0, j)),  # vi slab
                pl.BlockSpec((C, C), lambda n, j: (0, 0)),          # W_ir
                pl.BlockSpec((C, C), lambda n, j: (0, 0)),          # W_vi
                pl.BlockSpec((C, 1), lambda n, j: (0, 0)),          # bias
            ],
            out_specs=pl.BlockSpec((bn, C, tl), lambda n, j: (n, 0, j)),
        ),
        compiler_params=pltpu.CompilerParams(
            dimension_semantics=("parallel", "parallel"),
            vmem_limit_bytes=vmem_limit,
        ),
        cost_estimate=pl.CostEstimate(
            flops=flops, transcendentals=0, bytes_accessed=bytes_accessed),
    )(ir, vi, w_ir, w_vi, b)

    if hw_pad != HW:
        out = out[:, :, :HW]
    return out.reshape(N, C, H, W)


if __name__ == "__main__":
    key = jax.random.PRNGKey(0)
    k_ir, k_vi, k_w, k_b = jax.random.split(key, 4)

    # Small shapes consistent with the module.
    N, C, H, W = 2, 4, 16, 16
    en_ir = jax.random.normal(k_ir, (N, C, H, W), dtype=jnp.float32)
    en_vi = jax.random.normal(k_vi, (N, C, H, W), dtype=jnp.float32)

    # Conv2d(2C, C, kernel_size=1) parameters.
    weight = jax.random.normal(k_w, (C, 2 * C, 1, 1), dtype=jnp.float32) * 0.1
    bias = jax.random.normal(k_b, (C,), dtype=jnp.float32) * 0.1

    out = fusion_cat_forward(en_ir, en_vi, weight, bias)
    out = jax.block_until_ready(out)

    # Reference in plain JAX (same math as torch.cat + Conv2d 1x1).
    cat = jnp.concatenate([en_ir, en_vi], axis=1)               # (N, 2C, H, W)
    ref = (jnp.einsum("nchw,oc->nohw", cat, weight[:, :, 0, 0])
           + bias[None, :, None, None])
    assert out.shape == (N, C, H, W)
    assert jnp.allclose(out, ref, atol=1e-5, rtol=1e-5)

    print("KERNEL_OK")
</pallas_src>

<mosaic_0001>
module attributes {stable_mosaic.version = 11 : i64} {
  func.func @_fusion_cat_kernel(%arg0: i32, %arg1: i32, %arg2: memref<1x4x256xf32, #tpu.memory_space<vmem>>, %arg3: memref<1x4x256xf32, #tpu.memory_space<vmem>>, %arg4: memref<4x4xf32, #tpu.memory_space<vmem>>, %arg5: memref<4x4xf32, #tpu.memory_space<vmem>>, %arg6: memref<4x1xf32, #tpu.memory_space<vmem>>, %arg7: memref<1x4x256xf32, #tpu.memory_space<vmem>>) attributes {dimension_semantics = [#tpu.dimension_semantics<parallel>, #tpu.dimension_semantics<parallel>], iteration_bounds = array<i64: 2, 1>, scalar_prefetch = 0 : i64, scratch_operands = 0 : i64, tpu.core_type = #tpu.core_type<tc>, window_params = [{transform_indices = @transform_0, window_bounds = array<i64: 1, 4, 256>}, {transform_indices = @transform_1, window_bounds = array<i64: 1, 4, 256>}, {pipeline_mode = #tpu.pipeline_mode<synchronous>, transform_indices = @transform_2, window_bounds = array<i64: 4, 4>}, {pipeline_mode = #tpu.pipeline_mode<synchronous>, transform_indices = @transform_3, window_bounds = array<i64: 4, 4>}, {pipeline_mode = #tpu.pipeline_mode<synchronous>, transform_indices = @transform_4, window_bounds = array<i64: 4, 1>}, {transform_indices = @transform_5, window_bounds = array<i64: 1, 4, 256>}]} {
    %c0 = arith.constant 0 : index
    %c0_0 = arith.constant 0 : index
    %0 = vector.load %arg4[%c0, %c0_0] : memref<4x4xf32, #tpu.memory_space<vmem>>, vector<4x4xf32>
    %c0_1 = arith.constant 0 : index
    %c0_2 = arith.constant 0 : index
    %1 = vector.load %arg5[%c0_1, %c0_2] : memref<4x4xf32, #tpu.memory_space<vmem>>, vector<4x4xf32>
    %c0_3 = arith.constant 0 : index
    %c0_4 = arith.constant 0 : index
    %2 = vector.load %arg6[%c0_3, %c0_4] : memref<4x1xf32, #tpu.memory_space<vmem>>, vector<4x1xf32>
    %c0_5 = arith.constant 0 : index
    %c0_6 = arith.constant 0 : index
    %c0_7 = arith.constant 0 : index
    %3 = vector.load %arg2[%c0_5, %c0_6, %c0_7] : memref<1x4x256xf32, #tpu.memory_space<vmem>>, vector<1x4x256xf32>
    %4 = vector.shape_cast %3 : vector<1x4x256xf32> to vector<4x256xf32>
    %cst = arith.constant dense<0.000000e+00> : vector<4x256xf32>
    %5 = tpu.matmul %0, %4, %cst {dimension_numbers = #tpu.dot_dimension_numbers<[1], [0], [0], [1], [0, 0, 1, 1], [], []>} : vector<4x4xf32>, vector<4x256xf32>, vector<4x256xf32> -> vector<4x256xf32>
    %c0_8 = arith.constant 0 : index
    %c0_9 = arith.constant 0 : index
    %c0_10 = arith.constant 0 : index
    %6 = vector.load %arg3[%c0_8, %c0_9, %c0_10] : memref<1x4x256xf32, #tpu.memory_space<vmem>>, vector<1x4x256xf32>
    %7 = vector.shape_cast %6 : vector<1x4x256xf32> to vector<4x256xf32>
    %cst_11 = arith.constant dense<0.000000e+00> : vector<4x256xf32>
    %8 = tpu.matmul %1, %7, %cst_11 {dimension_numbers = #tpu.dot_dimension_numbers<[1], [0], [0], [1], [0, 0, 1, 1], [], []>} : vector<4x4xf32>, vector<4x256xf32>, vector<4x256xf32> -> vector<4x256xf32>
    %9 = arith.addf %5, %8 : vector<4x256xf32>
    %10 = vector.broadcast %2 : vector<4x1xf32> to vector<4x256xf32>
    %11 = arith.addf %9, %10 : vector<4x256xf32>
    %c0_12 = arith.constant 0 : index
    %c0_13 = arith.constant 0 : index
    %c0_14 = arith.constant 0 : index
    %12 = vector.load %arg7[%c0_12, %c0_13, %c0_14] : memref<1x4x256xf32, #tpu.memory_space<vmem>>, vector<1x4x256xf32>
    %13 = vector.shape_cast %12 : vector<1x4x256xf32> to vector<4x256xf32>
    %14 = vector.shape_cast %11 : vector<4x256xf32> to vector<1x4x256xf32>
    tpu.vector_store %arg7[%c0_12, %c0_13, %c0_14], %14 {strides = array<i32>} : memref<1x4x256xf32, #tpu.memory_space<vmem>>, vector<1x4x256xf32>,
    return
  }
  func.func @transform_0(%arg0: i32, %arg1: i32) -> (i32, i32, i32) {
    %c0_i32 = arith.constant 0 : i32
    %c0_i32_0 = arith.constant 0 : i32
    return %arg0, %c0_i32, %arg1 : i32, i32, i32
  }
  func.func @transform_1(%arg0: i32, %arg1: i32) -> (i32, i32, i32) {
    %c0_i32 = arith.constant 0 : i32
    %c0_i32_0 = arith.constant 0 : i32
    return %arg0, %c0_i32, %arg1 : i32, i32, i32
  }
  func.func @transform_2(%arg0: i32, %arg1: i32) -> (i32, i32) {
    %c0_i32 = arith.constant 0 : i32
    %c0_i32_0 = arith.constant 0 : i32
    %c0_i32_1 = arith.constant 0 : i32
    return %c0_i32, %c0_i32_0 : i32, i32
  }
  func.func @transform_3(%arg0: i32, %arg1: i32) -> (i32, i32) {
    %c0_i32 = arith.constant 0 : i32
    %c0_i32_0 = arith.constant 0 : i32
    %c0_i32_1 = arith.constant 0 : i32
    return %c0_i32, %c0_i32_0 : i32, i32
  }
  func.func @transform_4(%arg0: i32, %arg1: i32) -> (i32, i32) {
    %c0_i32 = arith.constant 0 : i32
    %c0_i32_0 = arith.constant 0 : i32
    %c0_i32_1 = arith.constant 0 : i32
    return %c0_i32, %c0_i32_0 : i32, i32
  }
  func.func @transform_5(%arg0: i32, %arg1: i32) -> (i32, i32, i32) {
    %c0_i32 = arith.constant 0 : i32
    %c0_i32_0 = arith.constant 0 : i32
    return %arg0, %c0_i32, %arg1 : i32, i32, i32
  }
}

</mosaic_0001>

<bundles_post_ra>
// kernel: tpu_custom_call.1
= control target key start
LH: loop header
LB: loop body
LE: loop exit
PB: predicated region body
PF: predicated region fallthrough
CT: control target
= control target key end

     0   :  { %s1078_s0 = inlined_call_operand.hbm [shape: f32[2,4,256], index: 0, kind: input, shape index: {}]   ;;  %s1079_s1 = inlined_call_operand.hbm [shape: f32[2,4,256], index: 1, kind: input, shape index: {}]   ;;  %s1080_s2 = inlined_call_operand.vmem [shape: f32[4,4], index: 2, kind: input, shape index: {}]   ;;  %s1081_s3 = inlined_call_operand.hbm [shape: f32[4,4], index: 3, kind: input, shape index: {}]   ;;  %s1082_s4 = inlined_call_operand.vmem [shape: f32[4,1], index: 4, kind: input, shape index: {}]   ;;  %s1083_s5 = inlined_call_operand.hbm [shape: f32[2,4,256], index: 5, kind: output, shape index: {}]  }
   0x1   :  { %1088 = sst [smem:[#allocation18_spill]] %s1081_s3 }
   0x2   :  { %10 = vsyncpa [#allocation3], 0 }
   0x3   :  { %12 = vsyncpa [#allocation3 + $0x1], 0 }
   0x4   :  { %13 = vsyncpa [#allocation6], 0 }
   0x5   :  { %15 = vsyncpa [#allocation6 + $0x1], 0 }
   0x6   :  { %16 = vsyncpa [#allocation4], 0 }
   0x7   :  { %18 = vsyncpa [#allocation4 + $0x1], 0  ;;  %s908_s18 = smov 0   ;;  %s910_s19 = smov 0  }
   0x8   :  { %s912_s20 = smov 0   ;;  %s914_s21 = smov 0  }
   0x9   :  { %s916_s22 = smov 0   ;;  %s918_s23 = smov 0  }
   0xa LB: > { %1089 = sst [smem:[#allocation13_spill]] %s854_s18  ;;  %s939_s24 = sadd.s32 4294967295, %s874_s23   ;;  %s874_s23 = sphi %s918_s23, %s24_s23   ;;  %s870_s22 = sphi %s916_s22, %s1104_s22   ;;  %s866_s21 = sphi %s914_s21, %s1103_s21   ;;  %s862_s20 = sphi %s912_s20, %s1107_s20   ;;  %s858_s19 = sphi %s910_s19, %s1106_s19   ;;  %s854_s18 = sphi %s908_s18, %s1105_s18  }
   0xb   : > { %1090 = sst [smem:[#allocation14_spill]] %s870_s22  ;;  %s583_s25 = sadd.s32 4294967294, %s874_s23  }
   0xc   : > { %p58_p0 = scmp.ne.s32.totalorder %s858_s19, %s854_s18  ;;  %p59_p1 = scmp.eq.s32.totalorder %s939_s24, 0 }
   0xd   : > { %p175_p2 = scmp.eq.s32.totalorder %s939_s24, 1  ;;  %p181_p3 = scmp.eq.s32.totalorder %s583_s25, 1 }
   0xe   : > { %p948_p4 = por %p59_p1, %p58_p0  ;;  %p584_p5 = scmp.ge.s32.totalorder %s874_s23, 1 }
   0xf   : > { %p953_p6 = por %p181_p3, %p58_p0  ;;  %p188_p7 = scmp.lt.s32.totalorder %s874_s23, 3 }
  0x10   : > { %s1094_s3 = sld [smem:[#allocation18_spill]]  ;;  %p586_p9 = scmp.ge.s32.totalorder %s874_s23, 2 }
  0x11   : > { %s1092_s27 = scalar_select %p953_p6, 1, 0 }
  0x12   : > { %p961_p8 = pnand %p584_p5, %p188_p7  ;;  %s876_s7 = smov [#allocation7]  }
  0x13   : > { %1093 = sst [smem:[#allocation15_spill]] %s1092_s27  ;;  %s205_s8 = sshll.u32 %s876_s7, 4  ;;  %s206_s8 = int_to_ptr.vmem [resolvable:$true] %s205_s8 }
  0x14   : > { %p624_p10 = pneg %p961_p8  ;;  %s36_s9 = sadd.s32 1, %s870_s22 }
  0x15   : > { %p38_p12 = scmp.ge.s32.totalorder %s36_s9, 2  ;;  %s45_s10 = sadd.s32 1, %s862_s20 }
  0x16   : > { %s203_s30 = sshll.u32 %s1094_s3, 4  ;;  %p625_p11 = pnand %p624_p10, %p59_p1  ;;  %s204_s30 = int_to_ptr.hbm [resolvable:$true] %s203_s30 }
  0x17   : > { %p52_p13 = scmp.ne.s32.totalorder %s862_s20, %s858_s19  ;;  %p53_p0 = scmp.eq.s32.totalorder %s874_s23, 0 }
  0x18   : > { %627 = dma.hbm_to_vmem [thread:$0]  (!%p625_p11), %s204_s30, 64, %s206_s8, [#allocation6]  }
  0x19   : > { %s1109_s9 = smov (%p38_p12, %s36_s9), 0  ;;  %p977_p3 = por %p53_p0, %p52_p13 }
  0x1a   : > { %1096 = sst [smem:[#allocation16_spill]] %s1109_s9  ;;  %p983_p5 = por %p175_p2, %p52_p13 }
  0x1b   : > { %s40_s13 = ssub.s32 %s870_s22, %s1109_s9  ;;  %p640_p7 = scmp.lt.s32.totalorder %s874_s23, 2 }
  0x1c   : > { %p43_p10 = scmp.eq.s32.totalorder %s40_s13, 0  ;;  %s219_s14 = sand.u32 1, %s862_s20  }
  0x1d   : > { %s587_s15 = sshll.u32 %s219_s14, 3  ;;  %s611_s17 = sshll.u32 %s870_s22, 3 }
  0x1e   : > { %s992_s16 = scalar_select %p43_p10, %s862_s20, %s45_s10  }
  0x1f   : > { %s230_s29 = scalar_lea.hbm %s1078_s0, %s611_s17  ;;  %s223_s30 = scalar_lea.vmem [#allocation2], %s587_s15 }
  0x20   : > { %1099 = sst [smem:[#allocation17_spill]] %s992_s16  ;;  %s234_s7 = sshll.u32 %s223_s30, 4  ;;  %s235_s7 = int_to_ptr.vmem [resolvable:$true] %s234_s7 }
  0x21   : > { %s232_s8 = sshll.u32 %s230_s29, 4  ;;  %p629_p2 = pnand %p640_p7, %p977_p3  ;;  %s233_s8 = int_to_ptr.hbm [resolvable:$true] %s232_s8 }
  0x22   : > { %s252_s13 = scalar_lea.hbm %s1079_s1, %s611_s17  ;;  %s241_s27 = sand.u32 1, %s874_s23  }
  0x23   : > { %s220_s18 = scalar_lea.sflag [#allocation3], %s219_s14  ;;  %s254_s10 = sshll.u32 %s252_s13, 4  ;;  %s255_s10 = int_to_ptr.hbm [resolvable:$true] %s254_s10 }
  0x24   : > { %631 = dma.hbm_to_vmem [thread:$0]  (!%p629_p2), %s233_s8, 128, %s235_s7, %s220_s18  }
  0x25   : > { %s245_s22 = scalar_lea.vmem [#allocation5], %s587_s15  ;;  %s242_s25 = scalar_lea.sflag [#allocation6], %s241_s27 }
  0x26   : > { %s256_s16 = sshll.u32 %s245_s22, 4  ;;  %265 = sbr.rel (%p961_p8) target bundleno = 209 (0xd1), region = 40  ;;  %s257_s16 = int_to_ptr.vmem [resolvable:$true] %s256_s16 }
  0x27   : > { %634 = dma.hbm_to_vmem [thread:$0]  (!%p629_p2), %s255_s10, 128, %s257_s16, %s242_s25  }
  0x28   : > { %s1007_s11 = sand.u32 (!%p961_p8), 1, %s858_s19  }
  0x29   : > { %s1010_s3 = sshll.u32 (!%p961_p8), %s1007_s11, 3  ;;  %s268_s18 = scalar_lea.sflag (!%p961_p8), [#allocation3], %s1007_s11 }
  0x2a   : > { %s271_s9 = scalar_lea.vmem (!%p961_p8), [#allocation2], %s1010_s3 }
  0x2b   : > { %837 = dma.done.wait (%p948_p4), %s268_s18, 128  }
  0x2c   : > { %839 = vsyncadd (%p948_p4), %s268_s18, 4294967168  ;;  %s277_s22 = sand.u32 1, %s939_s24   ;;  %s281_s6 = scalar_lea.vmem [#allocation5], %s1010_s3 }
  0x2d   : > { %s278_s27 = scalar_lea.sflag [#allocation6], %s277_s22 }
  0x2e   : > { %841 = dma.done.wait (%p948_p4), %s278_s27, 128  }
  0x2f   : > { %843 = vsyncadd (%p948_p4), %s278_s27, 4294967168 }
  0x30   : > { %845 = dma.done.wait (%p59_p1), [#allocation6], 64  }
  0x31   : > { %847 = vsyncadd (%p59_p1), [#allocation6], 4294967232  ;;  %v877_v0 = vmov 0   ;;  %v326_v1 = vld [vmem:[%s281_s6] sm:$0xff]  ;;  %v325_v3 = vld [vmem:[%s271_s9] sm:$0xff]  ;;  %vm335_vm0 = vcmask 1043456  }
  0x32   : > { %693 = vset.pattern.permute.xlu0 %v877_v0  ;;  %328 = vst [vmem:[#allocation1] ss:$2 sm:$0xff] %v326_v1  ;;  %v324_v2 = vld [vmem:[%s1082_s4] sm:$0xf]  ;;  %v323_v4 = vld [vmem:[#allocation7] sm:$0xf] }
  0x33   : > { %433 = vperm.xlu0 %693, %v324_v2   ;;  %vm331_vm1 = vcmask 31744   ;;  %v322_v7 = vld [vmem:[%s1080_s2] sm:$0xf]  ;;  %s613_s16 = sshll.u32 %s866_s21, 3  ;;  %s318_s30 = scalar_lea.vmem [#allocation8], %s1010_s3 }
  0x34   : > { %s458_s29 = scalar_lea.hbm %s1083_s5, %s613_s16  ;;  %s460_s7 = sshll.u32 %s318_s30, 4  ;;  %s461_s7 = int_to_ptr.vmem [resolvable:$true] %s460_s7 }
  0x35   : > { %s462_s8 = sshll.u32 %s458_s29, 4  ;;  %s445_s21 = scalar_lea.sflag [#allocation4], %s1007_s11  ;;  %s463_s8 = int_to_ptr.hbm [resolvable:$true] %s462_s8 }
  0x36   : > { %s798_s13 = sshra.s32 %s463_s8, 4  ;;  %s804_s3 = scalar_lea.hbm %s1083_s5, 16  ;;  %s799_s13 = int_to_ptr.hbm [resolvable:$true] %s798_s13 }
  0x37   : > { %s800_s10 = scalar_lea.hbm %s799_s13, 8  ;;  %p805_p11 = scmp.lt.s32.totalorder %s799_s13, %s1083_s5 }
  0x38   : > { %p801_p1 = scmp.ne.s32.totalorder %s799_s13, %s800_s10  ;;  %p806_p12 = scmp.lt.s32.totalorder %s804_s3, %s800_s10 }
  0x39   : > { %v329_v5 = vld.sshfl [vmem:[#allocation1] sm:$0xff pattern:$0x75316420]  ;;  %v330_v6 = vld.sshfl [vmem:[#allocation1 + $0x8] sm:$0xff pattern:$0x75316420] }
  0x3a   : > { %381 = vst [vmem:[#allocation1] ss:$2 sm:$0xff] %v325_v3  ;;  %598 = vmatpush.msk.msra.mxu0 %vm335_vm0, %v329_v5  ;;  %600 = vmatpush.msk.msra.mxu1 %vm335_vm0, %v330_v6  ;;  %p802_p4 = pnand %p801_p1, %p983_p5  ;;  %p807_p13 = por %p806_p12, %p805_p11 }
  0x3b   : > { %599 = vmatmul.msk.f32.vlgmr.msra.gmra.mxu0 %vm331_vm1, %v323_v4  ;;  %601 = vmatmul.msk.f32.vlgmr.msra.gmra.mxu1 %vm331_vm1, %v323_v4 }
  0x3c   : > { %p803_p8 = pneg %p802_p4 }
  0x3e   : > { %p808_p0 = pnand %p807_p13, %p803_p8 }
  0x41   : > { %v382_v8 = vld.sshfl [vmem:[#allocation1] sm:$0xff pattern:$0x75316420]  ;;  %v383_v9 = vld.sshfl [vmem:[#allocation1 + $0x8] sm:$0xff pattern:$0x75316420] }
  0x42   : > { %602 = vmatpush.msk.msra.mxu2 %vm335_vm0, %v382_v8  ;;  %604 = vmatpush.msk.msra.mxu3 %vm335_vm0, %v383_v9 }
  0x43   : > { %603 = vmatmul.msk.f32.vlgmr.msra.gmra.mxu2 %vm331_vm1, %v322_v7  ;;  %605 = vmatmul.msk.f32.vlgmr.msra.gmra.mxu3 %vm331_vm1, %v322_v7 }
  0xa5   : > { %v434_v12 = vpop.permute.xlu0 %433 }
  0xb8   : > { %v357_v10 = vpop.f32.mrf.mxu0  ;;  %v377_v11 = vpop.f32.mrf.mxu1 }
  0xc6   : > { %v408_v13 = vpop.f32.mrf.mxu2  ;;  %v428_v14 = vpop.f32.mrf.mxu3 }
  0xc7   : > { %v409_v15 = vadd.f32 %v408_v13, %v357_v10  ;;  %v429_v16 = vadd.f32 %v428_v14, %v377_v11 }
  0xc9   : > { %v437_v17 = vadd.f32 %v434_v12, %v429_v16  ;;  %v436_v18 = vadd.f32 %v434_v12, %v409_v15 }
  0xcb   : > { %v440_v19 = vrot.slane %v437_v17, 4 }
  0xcd   : > { %v441_v20 = vsel %vm335_vm0, %v436_v18, %v440_v19 }
  0xce   : > { %443 = vst [vmem:[%s318_s30] sm:$0xff] %v441_v20 }
  0xcf   : > { %811 = shalt.err (!%p808_p0)
}
  0xd0   : > { %622 = dma.vmem_to_hbm [thread:$0]  (%p983_p5), %s461_s7, 128, %s463_s8, %s445_s21  }
  0xd1 PF: > { %s1100_s11 = sld [smem:[#allocation13_spill]]  ;;  %p636_p3 = pnand %p586_p9, %p953_p6 }
  0xd3   : > { %p637_p7 = pneg %p636_p3 }
  0xd7   : > { %s474_s6 = sand.u32 1, %s1100_s11  }
  0xd8   : > { %s475_s14 = scalar_lea.sflag [#allocation4], %s474_s6 }
  0xd9   : > { %849 = dma.done.wait (%p637_p7), %s475_s14, 128  }
  0xda   : > { %851 = vsyncadd (%p637_p7), %s475_s14, 4294967168  ;;  %s24_s23 = sadd.s32 1, %s874_s23   ;;  %s1102_s15 = sld [smem:[#allocation17_spill]] }
  0xdb   : > { %p21_p10 = scmp.ge.s32.totalorder %s24_s23, 4   ;;  %s1103_s21 = sld [smem:[#allocation14_spill]] }
  0xdc   : > { %s1104_s22 = sld [smem:[#allocation16_spill]]  ;;  %s1105_s18 = smov %s858_s19 }
  0xdd   : > { %s1106_s19 = smov %s862_s20  ;;  %23 = sbr.rel (!%p21_p10) target bundleno = 10 (0xa), region = 102 }
  0xe0   : > { %s1107_s20 = smov %s1102_s15 }
  0xe2   :  { %481 = vsyncpa [#allocation3], 1 }
  0xe3   :  { %483 = vsyncpa [#allocation3 + $0x1], 1 }
  0xe4   :  { %484 = vsyncpa [#allocation6], 1 }
  0xe5   :  { %486 = vsyncpa [#allocation6 + $0x1], 1 }
  0xe6   :  { %487 = vsyncpa [#allocation4], 1 }
  0xe7   :  { %489 = vsyncpa [#allocation4 + $0x1], 1 }

</bundles_post_ra>
